<compile_context>
chip_gen: v7x
topology: tpu7x:2x2x1
jax: 0.10.0
libtpu: 0.0.40
codegen_flags: <defaults>
</compile_context>

<pallas_src>
import math
from functools import partial

import jax
import jax.numpy as jnp
from jax.experimental import pallas as pl
from jax.experimental.pallas import tpu as pltpu

HIDDEN_SIZE = 6
INPUT_SIZE = 4
NUM_CLASSES = 1
NUM_LAYERS = 1
SEQ_LENGTH = 4
FC1_OUT = 20

# h_out.view(-1, hidden) == final h only for a single GRU layer.
assert NUM_LAYERS == 1, "kernel assumes num_layers == 1"

# --------------------------------------------------------------------------
# Packed parameter-slab layout (row offsets).  Each sub-array starts on an
# 8-row boundary (or shares a tile with other 1-row vectors) so every static
# sub-slice stays inside one (8, 128) sublane tile.
# --------------------------------------------------------------------------
_O_WI = 0        # rows 0..3   : (INPUT_SIZE,  3H)  [W_ir | W_iz | W_in]
_O_WH = 8        # rows 8..13  : (HIDDEN_SIZE, 3H)  [W_hr | W_hz | W_hn]
_O_B = 16        # row 16 = [b_ir+b_hr | b_iz+b_hz | b_in], row 17 = [0 | 0 | b_hn]
_O_F1W = 24      # rows 24..29 : (HIDDEN_SIZE, FC1_OUT)
_O_F1B = 32      # row 32      : (1, FC1_OUT)
_O_F2W = 33      # row 33      : (1, FC1_OUT)   (row form of fc2 weight)
_O_F2B = 34      # row 34      : (1, 1)
_SLAB_ROWS = 40
_SLAB_COLS = 128


# --------------------------------------------------------------------------
# Pallas kernel: hoisted input projection + VPU GRU recurrence + fc1/ReLU + fc2
# --------------------------------------------------------------------------
def _gru_kernel(x_ref, p_ref, out_ref, *, batch, seq_len):
    # x_ref : (B*T, D_in) batch-major rows (row b*T + t is batch b, step t)
    # p_ref : (_SLAB_ROWS, _SLAB_COLS) packed parameter slab (layout above)
    B, T = batch, seq_len
    D = x_ref.shape[1]
    H = HIDDEN_SIZE
    H3 = 3 * H

    # Carve the single slab with static slices (no extra DMAs, just vlds).
    w_i = p_ref[_O_WI:_O_WI + D, 0:H3]                  # (D, 3H)
    w_h = p_ref[_O_WH:_O_WH + H, 0:H3]                  # (H, 3H)
    b_gi = p_ref[_O_B:_O_B + 1, 0:H3]                   # (1, 3H)
    b_gh = p_ref[_O_B + 1:_O_B + 2, 0:H3]               # (1, 3H) only n-slot nonzero
    fc1_w = p_ref[_O_F1W:_O_F1W + H, 0:FC1_OUT]         # (H, 20)
    fc1_b = p_ref[_O_F1B:_O_F1B + 1, 0:FC1_OUT]         # (1, 20)
    fc2_w = p_ref[_O_F2W:_O_F2W + 1, 0:FC1_OUT]         # (1, 20)
    fc2_b = p_ref[_O_F2B:_O_F2B + 1, 0:NUM_CLASSES]     # (1, 1)

    # Hoisted input projection: ONE MXU pass covers every timestep.
    gi_all = jnp.dot(x_ref[...], w_i,
                     preferred_element_type=jnp.float32) + b_gi   # (B*T, 3H)

    # Hoist the sublane broadcasts of the W_h rows / n-bias out of the serial
    # loop (JAX does not CSE broadcast_in_dim).
    w_h_rows = [jnp.broadcast_to(w_h[k:k + 1, :], (B, H3)) for k in range(H)]
    b_gh_b = jnp.broadcast_to(b_gh, (B, H3))

    h = jnp.zeros((B, H), dtype=jnp.float32)     # h_0 = zeros (matches torch)

    # Serial recurrence; T is tiny and static -> Python unroll.  The per-step
    # h @ W_h stays on the VPU (H broadcast-MACs) so the critical path never
    # pays MXU push/drain latency.
    # TODO(synk): if SEQ_LENGTH grows, switch to lax.fori_loop carrying h and
    # read gi rows via pl.ds to keep vreg pressure flat.
    for t in range(T):
        gi = jnp.concatenate(
            [gi_all[b * T + t:b * T + t + 1, :] for b in range(B)], axis=0)  # (B,3H)
        gh = b_gh_b
        for k in range(H):
            gh = gh + h[:, k:k + 1] * w_h_rows[k]          # VPU rank-1 accumulate
        rz = jax.nn.sigmoid(gi[:, 0:2 * H] + gh[:, 0:2 * H])   # fused r/z: 1 EUP pass
        r = rz[:, 0:H]
        z = rz[:, H:2 * H]
        n = jnp.tanh(gi[:, 2 * H:H3] + r * gh[:, 2 * H:H3])
        h = (1.0 - z) * n + z * h

    # fc1 -> ReLU (off the serial path; a single small MXU dot is fine)
    hid = jnp.maximum(
        jnp.dot(h, fc1_w, preferred_element_type=jnp.float32) + fc1_b, 0.0)  # (B,20)
    # fc2 as a lane reduction against the row-stored weight (avoids a (20,1) operand)
    out = jnp.sum(hid * fc2_w, axis=-1, keepdims=True) + fc2_b               # (B,1)
    out_ref[...] = out.astype(out_ref.dtype)


# --------------------------------------------------------------------------
# Parameter init (deterministic, torch-like uniform(-1/sqrt(fan), 1/sqrt(fan)))
# Stored in the PyTorch layout; kernel packing happens once in prepare_params.
# --------------------------------------------------------------------------
def init_params(key):
    keys = jax.random.split(key, 8)
    k = 1.0 / math.sqrt(HIDDEN_SIZE)
    params = {
        "w_ih": jax.random.uniform(keys[0], (3 * HIDDEN_SIZE, INPUT_SIZE),
                                   jnp.float32, -k, k),
        "w_hh": jax.random.uniform(keys[1], (3 * HIDDEN_SIZE, HIDDEN_SIZE),
                                   jnp.float32, -k, k),
        "b_ih": jax.random.uniform(keys[2], (3 * HIDDEN_SIZE,),
                                   jnp.float32, -k, k),
        "b_hh": jax.random.uniform(keys[3], (3 * HIDDEN_SIZE,),
                                   jnp.float32, -k, k),
    }
    k1 = 1.0 / math.sqrt(HIDDEN_SIZE)
    params["fc1_w"] = jax.random.uniform(keys[4], (FC1_OUT, HIDDEN_SIZE),
                                         jnp.float32, -k1, k1)
    params["fc1_b"] = jax.random.uniform(keys[5], (FC1_OUT,),
                                         jnp.float32, -k1, k1)
    k2 = 1.0 / math.sqrt(FC1_OUT)
    params["fc2_w"] = jax.random.uniform(keys[6], (NUM_CLASSES, FC1_OUT),
                                         jnp.float32, -k2, k2)
    params["fc2_b"] = jax.random.uniform(keys[7], (NUM_CLASSES,),
                                         jnp.float32, -k2, k2)
    return params


# --------------------------------------------------------------------------
# One-time packing: transposes, gate fusion, bias folding, slab assembly.
# NOT on the per-call hot path.
# --------------------------------------------------------------------------
def prepare_params(params):
    H = HIDDEN_SIZE
    H3 = 3 * H
    # PyTorch GRU packs gates in (r, z, n) order along dim 0.
    w_i = jnp.transpose(params["w_ih"]).astype(jnp.float32)   # (D, 3H)
    w_h = jnp.transpose(params["w_hh"]).astype(jnp.float32)   # (H, 3H)
    b_ih, b_hh = params["b_ih"], params["b_hh"]
    # r/z hidden biases fold into the input-bias row; b_hn must stay separate
    # (it is gated by r).
    b_gi = b_ih + jnp.concatenate([b_hh[:2 * H], jnp.zeros((H,), jnp.float32)])
    b_gh = jnp.concatenate([jnp.zeros((2 * H,), jnp.float32), b_hh[2 * H:]])

    fc1_w = jnp.transpose(params["fc1_w"]).astype(jnp.float32)   # (H, 20)
    fc1_b = params["fc1_b"].astype(jnp.float32)                  # (20,)
    fc2_w_row = params["fc2_w"][0].astype(jnp.float32)           # (20,)
    fc2_b = params["fc2_b"].astype(jnp.float32)                  # (1,)

    slab = jnp.zeros((_SLAB_ROWS, _SLAB_COLS), jnp.float32)
    slab = slab.at[_O_WI:_O_WI + INPUT_SIZE, :H3].set(w_i)
    slab = slab.at[_O_WH:_O_WH + H, :H3].set(w_h)
    slab = slab.at[_O_B, :H3].set(b_gi)
    slab = slab.at[_O_B + 1, :H3].set(b_gh)
    slab = slab.at[_O_F1W:_O_F1W + H, :FC1_OUT].set(fc1_w)
    slab = slab.at[_O_F1B, :FC1_OUT].set(fc1_b)
    slab = slab.at[_O_F2W, :FC1_OUT].set(fc2_w_row)
    slab = slab.at[_O_F2B, :NUM_CLASSES].set(fc2_b)
    return slab


# --------------------------------------------------------------------------
# Wrapper: only a FREE batch-major reshape of x + the pallas_call (2 operands).
# --------------------------------------------------------------------------
@jax.jit
def gru_forward(x, slab):
    """x: (B, T, D_in) batch-first, like the PyTorch module. Returns (B, 1)."""
    B, T, D = x.shape
    x_flat = x.reshape(B * T, D).astype(jnp.float32)   # contiguous: no data movement

    vmem_spec = pl.BlockSpec(memory_space=pltpu.MemorySpace.VMEM)
    return pl.pallas_call(
        partial(_gru_kernel, batch=B, seq_len=T),
        out_shape=jax.ShapeDtypeStruct((B, NUM_CLASSES), jnp.float32),
        in_specs=[vmem_spec, vmem_spec],
        out_specs=vmem_spec,
    )(x_flat, slab)


# --------------------------------------------------------------------------
# Pure-JAX reference (same math as torch.nn.GRU + fc layers) for validation
# --------------------------------------------------------------------------
def reference_forward(x, params):
    B = x.shape[0]
    H = HIDDEN_SIZE
    w_ih, w_hh = params["w_ih"], params["w_hh"]
    b_ih, b_hh = params["b_ih"], params["b_hh"]
    h = jnp.zeros((B, H), jnp.float32)
    for t in range(x.shape[1]):
        xt = x[:, t, :]
        gi = xt @ w_ih.T + b_ih
        gh = h @ w_hh.T + b_hh
        r = jax.nn.sigmoid(gi[:, :H] + gh[:, :H])
        z = jax.nn.sigmoid(gi[:, H:2 * H] + gh[:, H:2 * H])
        n = jnp.tanh(gi[:, 2 * H:] + r * gh[:, 2 * H:])
        h = (1.0 - z) * n + z * h
    out = jnp.maximum(h @ params["fc1_w"].T + params["fc1_b"], 0.0)
    out = out @ params["fc2_w"].T + params["fc2_b"]
    return out


if __name__ == "__main__":
    key = jax.random.PRNGKey(0)
    pkey, xkey = jax.random.split(key)
    params = init_params(pkey)
    slab = prepare_params(params)   # one-time packing, outside the hot path

    # batch=2, seq=4, input=4 (consistent with the module's constants)
    x = jax.random.normal(xkey, (2, SEQ_LENGTH, INPUT_SIZE), jnp.float32)

    out = gru_forward(x, slab)
    out = jax.block_until_ready(out)

    ref = reference_forward(x, params)
    assert out.shape == (2, NUM_CLASSES)
    assert jnp.allclose(out, ref, atol=1e-5, rtol=1e-5), (out, ref)

    print("KERNEL_OK")
</pallas_src>

<mosaic_0001>
module attributes {stable_mosaic.version = 11 : i64} {
  func.func @_gru_kernel(%arg0: memref<8x4xf32, #tpu.memory_space<vmem>>, %arg1: memref<40x128xf32, #tpu.memory_space<vmem>>, %arg2: memref<2x1xf32, #tpu.memory_space<vmem>>) attributes {dimension_semantics = [], scalar_prefetch = 0 : i64, scratch_operands = 0 : i64, tpu.core_type = #tpu.core_type<tc>} {
    %c0 = arith.constant 0 : index
    %c0_0 = arith.constant 0 : index
    %0 = vector.load %arg1[%c0, %c0_0] : memref<40x128xf32, #tpu.memory_space<vmem>>, vector<4x18xf32>
    %c8 = arith.constant 8 : index
    %c0_1 = arith.constant 0 : index
    %1 = vector.load %arg1[%c8, %c0_1] : memref<40x128xf32, #tpu.memory_space<vmem>>, vector<6x18xf32>
    %c16 = arith.constant 16 : index
    %c0_2 = arith.constant 0 : index
    %2 = vector.load %arg1[%c16, %c0_2] : memref<40x128xf32, #tpu.memory_space<vmem>>, vector<1x18xf32>
    %c17 = arith.constant 17 : index
    %c0_3 = arith.constant 0 : index
    %3 = vector.load %arg1[%c17, %c0_3] : memref<40x128xf32, #tpu.memory_space<vmem>>, vector<1x18xf32>
    %c24 = arith.constant 24 : index
    %c0_4 = arith.constant 0 : index
    %4 = vector.load %arg1[%c24, %c0_4] : memref<40x128xf32, #tpu.memory_space<vmem>>, vector<6x20xf32>
    %c32 = arith.constant 32 : index
    %c0_5 = arith.constant 0 : index
    %5 = vector.load %arg1[%c32, %c0_5] : memref<40x128xf32, #tpu.memory_space<vmem>>, vector<1x20xf32>
    %c33 = arith.constant 33 : index
    %c0_6 = arith.constant 0 : index
    %6 = vector.load %arg1[%c33, %c0_6] : memref<40x128xf32, #tpu.memory_space<vmem>>, vector<1x20xf32>
    %c34 = arith.constant 34 : index
    %c0_7 = arith.constant 0 : index
    %7 = vector.load %arg1[%c34, %c0_7] : memref<40x128xf32, #tpu.memory_space<vmem>>, vector<1x1xf32>
    %c0_8 = arith.constant 0 : index
    %c0_9 = arith.constant 0 : index
    %8 = vector.load %arg0[%c0_8, %c0_9] : memref<8x4xf32, #tpu.memory_space<vmem>>, vector<8x4xf32>
    %cst = arith.constant dense<0.000000e+00> : vector<8x18xf32>
    %9 = tpu.matmul %8, %0, %cst {dimension_numbers = #tpu.dot_dimension_numbers<[1], [0], [0], [1], [0, 0, 1, 1], [], []>} : vector<8x4xf32>, vector<4x18xf32>, vector<8x18xf32> -> vector<8x18xf32>
    %10 = vector.broadcast %2 : vector<1x18xf32> to vector<8x18xf32>
    %11 = arith.addf %9, %10 : vector<8x18xf32>
    %12 = vector.extract_strided_slice %1 {offsets = [0, 0], sizes = [1, 18], strides = [1, 1]} : vector<6x18xf32> to vector<1x18xf32>
    %13 = vector.shape_cast %12 : vector<1x18xf32> to vector<1x18xf32>
    %14 = vector.broadcast %13 : vector<1x18xf32> to vector<2x18xf32>
    %15 = vector.extract_strided_slice %1 {offsets = [1, 0], sizes = [1, 18], strides = [1, 1]} : vector<6x18xf32> to vector<1x18xf32>
    %16 = vector.shape_cast %15 : vector<1x18xf32> to vector<1x18xf32>
    %17 = vector.broadcast %16 : vector<1x18xf32> to vector<2x18xf32>
    %18 = vector.extract_strided_slice %1 {offsets = [2, 0], sizes = [1, 18], strides = [1, 1]} : vector<6x18xf32> to vector<1x18xf32>
    %19 = vector.shape_cast %18 : vector<1x18xf32> to vector<1x18xf32>
    %20 = vector.broadcast %19 : vector<1x18xf32> to vector<2x18xf32>
    %21 = vector.extract_strided_slice %1 {offsets = [3, 0], sizes = [1, 18], strides = [1, 1]} : vector<6x18xf32> to vector<1x18xf32>
    %22 = vector.shape_cast %21 : vector<1x18xf32> to vector<1x18xf32>
    %23 = vector.broadcast %22 : vector<1x18xf32> to vector<2x18xf32>
    %24 = vector.extract_strided_slice %1 {offsets = [4, 0], sizes = [1, 18], strides = [1, 1]} : vector<6x18xf32> to vector<1x18xf32>
    %25 = vector.shape_cast %24 : vector<1x18xf32> to vector<1x18xf32>
    %26 = vector.broadcast %25 : vector<1x18xf32> to vector<2x18xf32>
    %27 = vector.extract_strided_slice %1 {offsets = [5, 0], sizes = [1, 18], strides = [1, 1]} : vector<6x18xf32> to vector<1x18xf32>
    %28 = vector.shape_cast %27 : vector<1x18xf32> to vector<1x18xf32>
    %29 = vector.broadcast %28 : vector<1x18xf32> to vector<2x18xf32>
    %30 = vector.shape_cast %3 : vector<1x18xf32> to vector<1x18xf32>
    %31 = vector.broadcast %30 : vector<1x18xf32> to vector<2x18xf32>
    %cst_10 = arith.constant 0.000000e+00 : f32
    %32 = vector.broadcast %cst_10 : f32 to vector<2x6xf32>
    %33 = vector.extract_strided_slice %11 {offsets = [0, 0], sizes = [1, 18], strides = [1, 1]} : vector<8x18xf32> to vector<1x18xf32>
    %34 = vector.extract_strided_slice %11 {offsets = [4, 0], sizes = [1, 18], strides = [1, 1]} : vector<8x18xf32> to vector<1x18xf32>
    %35 = tpu.concatenate %33, %34 in 0 : vector<1x18xf32>, vector<1x18xf32> -> vector<2x18xf32>
    %36 = vector.extract_strided_slice %32 {offsets = [0, 0], sizes = [2, 1], strides = [1, 1]} : vector<2x6xf32> to vector<2x1xf32>
    %37 = vector.broadcast %36 : vector<2x1xf32> to vector<2x18xf32>
    %38 = arith.mulf %37, %14 : vector<2x18xf32>
    %39 = arith.addf %31, %38 : vector<2x18xf32>
    %40 = vector.extract_strided_slice %32 {offsets = [0, 1], sizes = [2, 1], strides = [1, 1]} : vector<2x6xf32> to vector<2x1xf32>
    %41 = vector.broadcast %40 : vector<2x1xf32> to vector<2x18xf32>
    %42 = arith.mulf %41, %17 : vector<2x18xf32>
    %43 = arith.addf %39, %42 : vector<2x18xf32>
    %44 = vector.extract_strided_slice %32 {offsets = [0, 2], sizes = [2, 1], strides = [1, 1]} : vector<2x6xf32> to vector<2x1xf32>
    %45 = vector.broadcast %44 : vector<2x1xf32> to vector<2x18xf32>
    %46 = arith.mulf %45, %20 : vector<2x18xf32>
    %47 = arith.addf %43, %46 : vector<2x18xf32>
    %48 = vector.extract_strided_slice %32 {offsets = [0, 3], sizes = [2, 1], strides = [1, 1]} : vector<2x6xf32> to vector<2x1xf32>
    %49 = vector.broadcast %48 : vector<2x1xf32> to vector<2x18xf32>
    %50 = arith.mulf %49, %23 : vector<2x18xf32>
    %51 = arith.addf %47, %50 : vector<2x18xf32>
    %52 = vector.extract_strided_slice %32 {offsets = [0, 4], sizes = [2, 1], strides = [1, 1]} : vector<2x6xf32> to vector<2x1xf32>
    %53 = vector.broadcast %52 : vector<2x1xf32> to vector<2x18xf32>
    %54 = arith.mulf %53, %26 : vector<2x18xf32>
    %55 = arith.addf %51, %54 : vector<2x18xf32>
    %56 = vector.extract_strided_slice %32 {offsets = [0, 5], sizes = [2, 1], strides = [1, 1]} : vector<2x6xf32> to vector<2x1xf32>
    %57 = vector.broadcast %56 : vector<2x1xf32> to vector<2x18xf32>
    %58 = arith.mulf %57, %29 : vector<2x18xf32>
    %59 = arith.addf %55, %58 : vector<2x18xf32>
    %60 = vector.extract_strided_slice %35 {offsets = [0, 0], sizes = [2, 12], strides = [1, 1]} : vector<2x18xf32> to vector<2x12xf32>
    %61 = vector.extract_strided_slice %59 {offsets = [0, 0], sizes = [2, 12], strides = [1, 1]} : vector<2x18xf32> to vector<2x12xf32>
    %62 = arith.addf %60, %61 : vector<2x12xf32>
    %63 = arith.negf %62 : vector<2x12xf32>
    %64 = math.exp %63 : vector<2x12xf32>
    %cst_11 = arith.constant 1.000000e+00 : f32
    %65 = vector.broadcast %cst_11 : f32 to vector<2x12xf32>
    %66 = arith.addf %65, %64 : vector<2x12xf32>
    %67 = arith.divf %65, %66 : vector<2x12xf32>
    %68 = vector.extract_strided_slice %67 {offsets = [0, 0], sizes = [2, 6], strides = [1, 1]} : vector<2x12xf32> to vector<2x6xf32>
    %69 = vector.extract_strided_slice %67 {offsets = [0, 6], sizes = [2, 6], strides = [1, 1]} : vector<2x12xf32> to vector<2x6xf32>
    %70 = vector.extract_strided_slice %35 {offsets = [0, 12], sizes = [2, 6], strides = [1, 1]} : vector<2x18xf32> to vector<2x6xf32>
    %71 = vector.extract_strided_slice %59 {offsets = [0, 12], sizes = [2, 6], strides = [1, 1]} : vector<2x18xf32> to vector<2x6xf32>
    %72 = arith.mulf %68, %71 : vector<2x6xf32>
    %73 = arith.addf %70, %72 : vector<2x6xf32>
    %74 = math.tanh %73 : vector<2x6xf32>
    %cst_12 = arith.constant 1.000000e+00 : f32
    %75 = vector.broadcast %cst_12 : f32 to vector<2x6xf32>
    %76 = arith.subf %75, %69 : vector<2x6xf32>
    %77 = arith.mulf %76, %74 : vector<2x6xf32>
    %78 = arith.mulf %69, %32 : vector<2x6xf32>
    %79 = arith.addf %77, %78 : vector<2x6xf32>
    %80 = vector.extract_strided_slice %11 {offsets = [1, 0], sizes = [1, 18], strides = [1, 1]} : vector<8x18xf32> to vector<1x18xf32>
    %81 = vector.extract_strided_slice %11 {offsets = [5, 0], sizes = [1, 18], strides = [1, 1]} : vector<8x18xf32> to vector<1x18xf32>
    %82 = tpu.concatenate %80, %81 in 0 : vector<1x18xf32>, vector<1x18xf32> -> vector<2x18xf32>
    %83 = vector.extract_strided_slice %79 {offsets = [0, 0], sizes = [2, 1], strides = [1, 1]} : vector<2x6xf32> to vector<2x1xf32>
    %84 = vector.broadcast %83 : vector<2x1xf32> to vector<2x18xf32>
    %85 = arith.mulf %84, %14 : vector<2x18xf32>
    %86 = arith.addf %31, %85 : vector<2x18xf32>
    %87 = vector.extract_strided_slice %79 {offsets = [0, 1], sizes = [2, 1], strides = [1, 1]} : vector<2x6xf32> to vector<2x1xf32>
    %88 = vector.broadcast %87 : vector<2x1xf32> to vector<2x18xf32>
    %89 = arith.mulf %88, %17 : vector<2x18xf32>
    %90 = arith.addf %86, %89 : vector<2x18xf32>
    %91 = vector.extract_strided_slice %79 {offsets = [0, 2], sizes = [2, 1], strides = [1, 1]} : vector<2x6xf32> to vector<2x1xf32>
    %92 = vector.broadcast %91 : vector<2x1xf32> to vector<2x18xf32>
    %93 = arith.mulf %92, %20 : vector<2x18xf32>
    %94 = arith.addf %90, %93 : vector<2x18xf32>
    %95 = vector.extract_strided_slice %79 {offsets = [0, 3], sizes = [2, 1], strides = [1, 1]} : vector<2x6xf32> to vector<2x1xf32>
    %96 = vector.broadcast %95 : vector<2x1xf32> to vector<2x18xf32>
    %97 = arith.mulf %96, %23 : vector<2x18xf32>
    %98 = arith.addf %94, %97 : vector<2x18xf32>
    %99 = vector.extract_strided_slice %79 {offsets = [0, 4], sizes = [2, 1], strides = [1, 1]} : vector<2x6xf32> to vector<2x1xf32>
    %100 = vector.broadcast %99 : vector<2x1xf32> to vector<2x18xf32>
    %101 = arith.mulf %100, %26 : vector<2x18xf32>
    %102 = arith.addf %98, %101 : vector<2x18xf32>
    %103 = vector.extract_strided_slice %79 {offsets = [0, 5], sizes = [2, 1], strides = [1, 1]} : vector<2x6xf32> to vector<2x1xf32>
    %104 = vector.broadcast %103 : vector<2x1xf32> to vector<2x18xf32>
    %105 = arith.mulf %104, %29 : vector<2x18xf32>
    %106 = arith.addf %102, %105 : vector<2x18xf32>
    %107 = vector.extract_strided_slice %82 {offsets = [0, 0], sizes = [2, 12], strides = [1, 1]} : vector<2x18xf32> to vector<2x12xf32>
    %108 = vector.extract_strided_slice %106 {offsets = [0, 0], sizes = [2, 12], strides = [1, 1]} : vector<2x18xf32> to vector<2x12xf32>
    %109 = arith.addf %107, %108 : vector<2x12xf32>
    %110 = arith.negf %109 : vector<2x12xf32>
    %111 = math.exp %110 : vector<2x12xf32>
    %cst_13 = arith.constant 1.000000e+00 : f32
    %112 = vector.broadcast %cst_13 : f32 to vector<2x12xf32>
    %113 = arith.addf %112, %111 : vector<2x12xf32>
    %114 = arith.divf %112, %113 : vector<2x12xf32>
    %115 = vector.extract_strided_slice %114 {offsets = [0, 0], sizes = [2, 6], strides = [1, 1]} : vector<2x12xf32> to vector<2x6xf32>
    %116 = vector.extract_strided_slice %114 {offsets = [0, 6], sizes = [2, 6], strides = [1, 1]} : vector<2x12xf32> to vector<2x6xf32>
    %117 = vector.extract_strided_slice %82 {offsets = [0, 12], sizes = [2, 6], strides = [1, 1]} : vector<2x18xf32> to vector<2x6xf32>
    %118 = vector.extract_strided_slice %106 {offsets = [0, 12], sizes = [2, 6], strides = [1, 1]} : vector<2x18xf32> to vector<2x6xf32>
    %119 = arith.mulf %115, %118 : vector<2x6xf32>
    %120 = arith.addf %117, %119 : vector<2x6xf32>
    %121 = math.tanh %120 : vector<2x6xf32>
    %cst_14 = arith.constant 1.000000e+00 : f32
    %122 = vector.broadcast %cst_14 : f32 to vector<2x6xf32>
    %123 = arith.subf %122, %116 : vector<2x6xf32>
    %124 = arith.mulf %123, %121 : vector<2x6xf32>
    %125 = arith.mulf %116, %79 : vector<2x6xf32>
    %126 = arith.addf %124, %125 : vector<2x6xf32>
    %127 = vector.extract_strided_slice %11 {offsets = [2, 0], sizes = [1, 18], strides = [1, 1]} : vector<8x18xf32> to vector<1x18xf32>
    %128 = vector.extract_strided_slice %11 {offsets = [6, 0], sizes = [1, 18], strides = [1, 1]} : vector<8x18xf32> to vector<1x18xf32>
    %129 = tpu.concatenate %127, %128 in 0 : vector<1x18xf32>, vector<1x18xf32> -> vector<2x18xf32>
    %130 = vector.extract_strided_slice %126 {offsets = [0, 0], sizes = [2, 1], strides = [1, 1]} : vector<2x6xf32> to vector<2x1xf32>
    %131 = vector.broadcast %130 : vector<2x1xf32> to vector<2x18xf32>
    %132 = arith.mulf %131, %14 : vector<2x18xf32>
    %133 = arith.addf %31, %132 : vector<2x18xf32>
    %134 = vector.extract_strided_slice %126 {offsets = [0, 1], sizes = [2, 1], strides = [1, 1]} : vector<2x6xf32> to vector<2x1xf32>
    %135 = vector.broadcast %134 : vector<2x1xf32> to vector<2x18xf32>
    %136 = arith.mulf %135, %17 : vector<2x18xf32>
    %137 = arith.addf %133, %136 : vector<2x18xf32>
    %138 = vector.extract_strided_slice %126 {offsets = [0, 2], sizes = [2, 1], strides = [1, 1]} : vector<2x6xf32> to vector<2x1xf32>
    %139 = vector.broadcast %138 : vector<2x1xf32> to vector<2x18xf32>
    %140 = arith.mulf %139, %20 : vector<2x18xf32>
    %141 = arith.addf %137, %140 : vector<2x18xf32>
    %142 = vector.extract_strided_slice %126 {offsets = [0, 3], sizes = [2, 1], strides = [1, 1]} : vector<2x6xf32> to vector<2x1xf32>
    %143 = vector.broadcast %142 : vector<2x1xf32> to vector<2x18xf32>
    %144 = arith.mulf %143, %23 : vector<2x18xf32>
    %145 = arith.addf %141, %144 : vector<2x18xf32>
    %146 = vector.extract_strided_slice %126 {offsets = [0, 4], sizes = [2, 1], strides = [1, 1]} : vector<2x6xf32> to vector<2x1xf32>
    %147 = vector.broadcast %146 : vector<2x1xf32> to vector<2x18xf32>
    %148 = arith.mulf %147, %26 : vector<2x18xf32>
    %149 = arith.addf %145, %148 : vector<2x18xf32>
    %150 = vector.extract_strided_slice %126 {offsets = [0, 5], sizes = [2, 1], strides = [1, 1]} : vector<2x6xf32> to vector<2x1xf32>
    %151 = vector.broadcast %150 : vector<2x1xf32> to vector<2x18xf32>
    %152 = arith.mulf %151, %29 : vector<2x18xf32>
    %153 = arith.addf %149, %152 : vector<2x18xf32>
    %154 = vector.extract_strided_slice %129 {offsets = [0, 0], sizes = [2, 12], strides = [1, 1]} : vector<2x18xf32> to vector<2x12xf32>
    %155 = vector.extract_strided_slice %153 {offsets = [0, 0], sizes = [2, 12], strides = [1, 1]} : vector<2x18xf32> to vector<2x12xf32>
    %156 = arith.addf %154, %155 : vector<2x12xf32>
    %157 = arith.negf %156 : vector<2x12xf32>
    %158 = math.exp %157 : vector<2x12xf32>
    %cst_15 = arith.constant 1.000000e+00 : f32
    %159 = vector.broadcast %cst_15 : f32 to vector<2x12xf32>
    %160 = arith.addf %159, %158 : vector<2x12xf32>
    %161 = arith.divf %159, %160 : vector<2x12xf32>
    %162 = vector.extract_strided_slice %161 {offsets = [0, 0], sizes = [2, 6], strides = [1, 1]} : vector<2x12xf32> to vector<2x6xf32>
    %163 = vector.extract_strided_slice %161 {offsets = [0, 6], sizes = [2, 6], strides = [1, 1]} : vector<2x12xf32> to vector<2x6xf32>
    %164 = vector.extract_strided_slice %129 {offsets = [0, 12], sizes = [2, 6], strides = [1, 1]} : vector<2x18xf32> to vector<2x6xf32>
    %165 = vector.extract_strided_slice %153 {offsets = [0, 12], sizes = [2, 6], strides = [1, 1]} : vector<2x18xf32> to vector<2x6xf32>
    %166 = arith.mulf %162, %165 : vector<2x6xf32>
    %167 = arith.addf %164, %166 : vector<2x6xf32>
    %168 = math.tanh %167 : vector<2x6xf32>
    %cst_16 = arith.constant 1.000000e+00 : f32
    %169 = vector.broadcast %cst_16 : f32 to vector<2x6xf32>
    %170 = arith.subf %169, %163 : vector<2x6xf32>
    %171 = arith.mulf %170, %168 : vector<2x6xf32>
    %172 = arith.mulf %163, %126 : vector<2x6xf32>
    %173 = arith.addf %171, %172 : vector<2x6xf32>
    %174 = vector.extract_strided_slice %11 {offsets = [3, 0], sizes = [1, 18], strides = [1, 1]} : vector<8x18xf32> to vector<1x18xf32>
    %175 = vector.extract_strided_slice %11 {offsets = [7, 0], sizes = [1, 18], strides = [1, 1]} : vector<8x18xf32> to vector<1x18xf32>
    %176 = tpu.concatenate %174, %175 in 0 : vector<1x18xf32>, vector<1x18xf32> -> vector<2x18xf32>
    %177 = vector.extract_strided_slice %173 {offsets = [0, 0], sizes = [2, 1], strides = [1, 1]} : vector<2x6xf32> to vector<2x1xf32>
    %178 = vector.broadcast %177 : vector<2x1xf32> to vector<2x18xf32>
    %179 = arith.mulf %178, %14 : vector<2x18xf32>
    %180 = arith.addf %31, %179 : vector<2x18xf32>
    %181 = vector.extract_strided_slice %173 {offsets = [0, 1], sizes = [2, 1], strides = [1, 1]} : vector<2x6xf32> to vector<2x1xf32>
    %182 = vector.broadcast %181 : vector<2x1xf32> to vector<2x18xf32>
    %183 = arith.mulf %182, %17 : vector<2x18xf32>
    %184 = arith.addf %180, %183 : vector<2x18xf32>
    %185 = vector.extract_strided_slice %173 {offsets = [0, 2], sizes = [2, 1], strides = [1, 1]} : vector<2x6xf32> to vector<2x1xf32>
    %186 = vector.broadcast %185 : vector<2x1xf32> to vector<2x18xf32>
    %187 = arith.mulf %186, %20 : vector<2x18xf32>
    %188 = arith.addf %184, %187 : vector<2x18xf32>
    %189 = vector.extract_strided_slice %173 {offsets = [0, 3], sizes = [2, 1], strides = [1, 1]} : vector<2x6xf32> to vector<2x1xf32>
    %190 = vector.broadcast %189 : vector<2x1xf32> to vector<2x18xf32>
    %191 = arith.mulf %190, %23 : vector<2x18xf32>
    %192 = arith.addf %188, %191 : vector<2x18xf32>
    %193 = vector.extract_strided_slice %173 {offsets = [0, 4], sizes = [2, 1], strides = [1, 1]} : vector<2x6xf32> to vector<2x1xf32>
    %194 = vector.broadcast %193 : vector<2x1xf32> to vector<2x18xf32>
    %195 = arith.mulf %194, %26 : vector<2x18xf32>
    %196 = arith.addf %192, %195 : vector<2x18xf32>
    %197 = vector.extract_strided_slice %173 {offsets = [0, 5], sizes = [2, 1], strides = [1, 1]} : vector<2x6xf32> to vector<2x1xf32>
    %198 = vector.broadcast %197 : vector<2x1xf32> to vector<2x18xf32>
    %199 = arith.mulf %198, %29 : vector<2x18xf32>
    %200 = arith.addf %196, %199 : vector<2x18xf32>
    %201 = vector.extract_strided_slice %176 {offsets = [0, 0], sizes = [2, 12], strides = [1, 1]} : vector<2x18xf32> to vector<2x12xf32>
    %202 = vector.extract_strided_slice %200 {offsets = [0, 0], sizes = [2, 12], strides = [1, 1]} : vector<2x18xf32> to vector<2x12xf32>
    %203 = arith.addf %201, %202 : vector<2x12xf32>
    %204 = arith.negf %203 : vector<2x12xf32>
    %205 = math.exp %204 : vector<2x12xf32>
    %cst_17 = arith.constant 1.000000e+00 : f32
    %206 = vector.broadcast %cst_17 : f32 to vector<2x12xf32>
    %207 = arith.addf %206, %205 : vector<2x12xf32>
    %208 = arith.divf %206, %207 : vector<2x12xf32>
    %209 = vector.extract_strided_slice %208 {offsets = [0, 0], sizes = [2, 6], strides = [1, 1]} : vector<2x12xf32> to vector<2x6xf32>
    %210 = vector.extract_strided_slice %208 {offsets = [0, 6], sizes = [2, 6], strides = [1, 1]} : vector<2x12xf32> to vector<2x6xf32>
    %211 = vector.extract_strided_slice %176 {offsets = [0, 12], sizes = [2, 6], strides = [1, 1]} : vector<2x18xf32> to vector<2x6xf32>
    %212 = vector.extract_strided_slice %200 {offsets = [0, 12], sizes = [2, 6], strides = [1, 1]} : vector<2x18xf32> to vector<2x6xf32>
    %213 = arith.mulf %209, %212 : vector<2x6xf32>
    %214 = arith.addf %211, %213 : vector<2x6xf32>
    %215 = math.tanh %214 : vector<2x6xf32>
    %cst_18 = arith.constant 1.000000e+00 : f32
    %216 = vector.broadcast %cst_18 : f32 to vector<2x6xf32>
    %217 = arith.subf %216, %210 : vector<2x6xf32>
    %218 = arith.mulf %217, %215 : vector<2x6xf32>
    %219 = arith.mulf %210, %173 : vector<2x6xf32>
    %220 = arith.addf %218, %219 : vector<2x6xf32>
    %cst_19 = arith.constant dense<0.000000e+00> : vector<2x20xf32>
    %221 = tpu.matmul %220, %4, %cst_19 {dimension_numbers = #tpu.dot_dimension_numbers<[1], [0], [0], [1], [0, 0, 1, 1], [], []>} : vector<2x6xf32>, vector<6x20xf32>, vector<2x20xf32> -> vector<2x20xf32>
    %222 = vector.broadcast %5 : vector<1x20xf32> to vector<2x20xf32>
    %223 = arith.addf %221, %222 : vector<2x20xf32>
    %cst_20 = arith.constant 0.000000e+00 : f32
    %224 = vector.broadcast %cst_20 : f32 to vector<2x20xf32>
    %225 = arith.maximumf %223, %224 : vector<2x20xf32>
    %226 = vector.broadcast %6 : vector<1x20xf32> to vector<2x20xf32>
    %227 = arith.mulf %225, %226 : vector<2x20xf32>
    %cst_21 = arith.constant dense<0.000000e+00> : vector<2xf32>
    %228 = vector.multi_reduction <add>, %227, %cst_21 [1] : vector<2x20xf32> to vector<2xf32>
    %229 = vector.shape_cast %228 : vector<2xf32> to vector<2x1xf32>
    %230 = vector.broadcast %7 : vector<1x1xf32> to vector<2x1xf32>
    %231 = arith.addf %229, %230 : vector<2x1xf32>
    %c0_22 = arith.constant 0 : index
    %c0_23 = arith.constant 0 : index
    %232 = vector.load %arg2[%c0_22, %c0_23] : memref<2x1xf32, #tpu.memory_space<vmem>>, vector<2x1xf32>
    tpu.vector_store %arg2[%c0_22, %c0_23], %231 {strides = array<i32>} : memref<2x1xf32, #tpu.memory_space<vmem>>, vector<2x1xf32>,
    return
  }
}

</mosaic_0001>

<bundles_post_ra>
// kernel: gru_forward.1
= control target key start
LH: loop header
LB: loop body
LE: loop exit
PB: predicated region body
PF: predicated region fallthrough
CT: control target
= control target key end

     0   :  { %7 = vsyncpa [#allocation3], 0  ;;  %s791_s0 = inlined_call_operand.hbm [shape: f32[8,4], index: 0, kind: input, shape index: {}]   ;;  %s792_s1 = inlined_call_operand.hbm [shape: f32[40,128], index: 1, kind: input, shape index: {}]   ;;  %s793_s2 = inlined_call_operand.vmem [shape: f32[2,1], index: 2, kind: output, shape index: {}]  }
   0x1   :  { %8 = vsyncpa [#allocation5], 0  ;;  %s641_s9 = smov [#allocation2]   ;;  %s642_s11 = smov [#allocation4]  }
   0x2   :  { %s15_s10 = sshll.u32 %s641_s9, 4  ;;  %s24_s12 = sshll.u32 %s642_s11, 4  ;;  %s16_s10 = int_to_ptr.vmem [resolvable:$true] %s15_s10  ;;  %s671_s12 = int_to_ptr.vmem [resolvable:$true] %s24_s12 }
   0x3   :  { %s593_s15 = scalar_lea.hbm %s791_s0, 128 }
   0x4   :  { %p594_p0 = scmp.ne.s32.totalorder %s791_s0, %s593_s15  ;;  %p597_p1 = scmp.lt.u32.totalorder %s593_s15, %s791_s0 }
   0x6   :  { %p599_p2 = pnand %p597_p1, %p594_p0 }
   0x8   :  { %602 = shalt.err (!%p599_p2)
}
   0x9   :  { %s603_s20 = scalar_lea.vmem %s16_s10, 128  ;;  %p608_p4 = scmp.lt.s32.totalorder %s16_s10, %s16_s10 }
   0xa   :  { %p604_p3 = scmp.ne.s32.totalorder %s16_s10, %s603_s20  ;;  %p609_p5 = scmp.lt.s32.totalorder %s603_s20, %s603_s20 }
   0xc   :  { %p610_p6 = por %p609_p5, %p608_p4 }
   0xe   :  { %p611_p7 = pnand %p610_p6, %p604_p3 }
  0x10   :  { %614 = shalt.err (!%p611_p7)
}
  0x11   :  { %18 = dma.hbm_to_vmem [thread:$0]  %s791_s0, 128, %s16_s10, [#allocation3]  }
  0x12   :  { %s615_s25 = scalar_lea.hbm %s792_s1, 640 }
  0x13   :  { %p616_p8 = scmp.ne.s32.totalorder %s792_s1, %s615_s25  ;;  %p619_p9 = scmp.lt.u32.totalorder %s615_s25, %s792_s1 }
  0x15   :  { %p621_p10 = pnand %p619_p9, %p616_p8 }
  0x17   :  { %624 = shalt.err (!%p621_p10)
}
  0x18   :  { %s625_s30 = scalar_lea.vmem %s671_s12, 640  ;;  %p630_p12 = scmp.lt.s32.totalorder %s671_s12, %s671_s12 }
  0x19   :  { %p626_p11 = scmp.ne.s32.totalorder %s671_s12, %s625_s30  ;;  %p631_p13 = scmp.lt.s32.totalorder %s625_s30, %s625_s30 }
  0x1b   :  { %p632_p0 = por %p631_p13, %p630_p12 }
  0x1d   :  { %p633_p1 = pnand %p632_p0, %p626_p11 }
  0x1f   :  { %636 = shalt.err (!%p633_p1)
}
  0x20   :  { %s643_s0 = smov 128   ;;  %s644_s3 = smov 8  }
  0x21   :  { %30 = dma.hbm_to_vmem [thread:$0]  %s792_s1, 640, %s671_s12, [#allocation5], %s643_s0, %s643_s0, %s644_s3  }
  0x22   :  { %637 = dma.done.wait [#allocation3], 128  }
  0x23   :  { %638 = vsyncadd [#allocation3], 4294967168 }
  0x24   :  { %639 = dma.done.wait [#allocation5], 640  }
  0x25   :  { %640 = vsyncadd [#allocation5], 4294966656  ;;  %v645_v0 = vmov 0.0   ;;  %vm646_vm0 = vmmov 0   ;;  %v128_v1 = vlaneseq  ;;  %vm54_vm1 = vcmask 1043456   ;;  %v45_v8 = vld [vmem:[#allocation2] sm:$0xff] }
  0x26   :  { %525 = vmatprep.subr.mxu0 %v645_v0  ;;  %527 = vmatprep.mubr.msk.f32.mxu0 %vm646_vm0, %v645_v0  ;;  %vm50_vm2 = vcmask 31744   ;;  %v37_v7 = vld [vmem:[#allocation4] sm:$0xf]  ;;  %v38_v9 = vld [vmem:[#allocation4 + $0x8] sm:$0x3f]  ;;  %s647_s1 = smov 116  }
  0x27   :  { %530 = vmatprep.subr.mxu1 %v645_v0  ;;  %532 = vmatprep.mubr.msk.f32.mxu1 %vm646_vm0, %v645_v0  ;;  %v129_v2 = vshrl.u32 %v128_v1, 7  ;;  %v708_v14 = vld [vmem:[#allocation4 + $0x11] ss:$0 sm:$0xff]  ;;  %v508_v31 = vld [vmem:[#allocation4 + $0x10] ss:$0 sm:$0xff]  ;;  %vm159_vm3 = vcmask 1040384  }
  0x28   :  { %526 = vmatpush3.msk.msra.mxu0 %vm54_vm1, %v37_v7  ;;  %s648_s6 = smov 12   ;;  %v649_v54 = vmov 7   ;;  %v650_v55 = vmov 6   ;;  %s651_s7 = smov 122   ;;  %v652_v62 = vmov 10   ;;  %v653_v63 = vmov 8  }
  0x29   :  { %v130_v3 = vsub.s32 0, %v129_v2  ;;  %v134_v4 = vsub.s32 1, %v129_v2  ;;  %v138_v5 = vsub.s32 2, %v129_v2  ;;  %v142_v6 = vsub.s32 3, %v129_v2  ;;  %528 = vmatmul.mubr.msk.f32.vlgmr.msra.gmra.mrb[0].mxu0 %vm50_vm2, %v45_v8  ;;  %551 = vset.pattern.permute.xlu0 %v649_v54 }
  0x2a   :  { %v146_v13 = vsub.s32 4, %v129_v2  ;;  %v150_v16 = vsub.s32 5, %v129_v2  ;;  %550 = vset.pattern.permute.xlu1 %v650_v55  ;;  %v654_v0 = vmov 9   ;;  %v655_v1 = vmov 11  }
  0x2b   :  { %v702_v10 = vrot.slane %v38_v9, %v130_v3  ;;  %v704_v11 = vrot.slane %v38_v9, %v134_v4  ;;  %v706_v12 = vrot.slane %v38_v9, %v138_v5  ;;  %v710_v15 = vrot.slane %v38_v9, %v142_v6 }
  0x2c   :  { %v714_v19 = vrot.slane %v38_v9, %v146_v13  ;;  %v718_v22 = vrot.slane %v38_v9, %v150_v16  ;;  %vm411_vm4 = vcmask 1045504   ;;  %vm408_vm5 = vcmask 48128  }
  0x2d   :  { %v161_v17 = vmul.f32 0.0, %v702_v10  ;;  %v163_v18 = vmul.f32 0.0, %v704_v11  ;;  %v165_v21 = vmul.f32 0.0, %v706_v12  ;;  %v167_v24 = vmul.f32 0.0, %v710_v15 }
  0x2e   :  { %v169_v26 = vmul.f32 0.0, %v714_v19  ;;  %v171_v28 = vmul.f32 0.0, %v718_v22  ;;  %vm491_vm6 = vcmask 156672   ;;  %vm500_vm7 = vcmask 1024  }
  0x2f   :  { %v162_v20 = vadd.f32 %v708_v14, %v161_v17 }
  0x31   :  { %v164_v23 = vadd.f32 %v163_v18, %v162_v20 }
  0x33   :  { %v166_v25 = vadd.f32 %v165_v21, %v164_v23 }
  0x35   :  { %v168_v27 = vadd.f32 %v167_v24, %v166_v25 }
  0x37   :  { %v170_v29 = vadd.f32 %v169_v26, %v168_v27 }
  0x39   :  { %v172_v30 = vadd.f32 %v171_v28, %v170_v29 }
  0x3b   :  { %181 = vrot.lane.b32.xlu0 %v172_v30, %s647_s1 }
  0xad   :  { %v182_v49 = vpop.permute.xlu0 %181 }
  0xfc   :  { %v124_v32 = vpop.f32.mrb[0].mxu0 }
  0xfd   :  { %v125_v33 = vadd.f32 %v508_v31, %v124_v32  ;;  %v529_v34 = vpop.f32.mrb[1].mxu0 }
  0xff   :  { %v157_v35 = vrot.slane %v125_v33, 3  ;;  %v199_v36 = vrot.slane %v125_v33, 1  ;;  %v201_v37 = vrot.slane %v125_v33, 4  ;;  %v267_v38 = vrot.slane %v125_v33, 2 }
 0x100   :  { %v269_v39 = vrot.slane %v125_v33, 5  ;;  %v335_v40 = vrot.slane %v125_v33, 6 }
 0x101   :  { %v160_v41 = vsel %vm159_vm3, %v125_v33, %v157_v35  ;;  %v724_v42 = vsel %vm159_vm3, %v199_v36, %v201_v37 }
 0x102   :  { %v173_v43 = vadd.f32 %v172_v30, %v160_v41  ;;  %v726_v44 = vsel %vm159_vm3, %v267_v38, %v269_v39  ;;  %v728_v45 = vsel %vm159_vm3, %v157_v35, %v335_v40 }
 0x104   :  { %v512_v46 = vmul.f32 -1.442695, %v173_v43 }
 0x106   :  { %569 = vpow2.f32 %v512_v46 }
 0x110   :  { %v570_v47 = vpop.eup %569 }
 0x111   :  { %v177_v48 = vadd.f32 1.0, %v570_v47 }
 0x113   :  { %571 = vrcp.f32 %v177_v48 }
 0x11d   :  { %v572_v50 = vpop.eup %571 }
 0x11e   :  { %v184_v51 = vmul.f32 %v572_v50, %v182_v49  ;;  %v191_v57 = vsub.f32 1.0, %v572_v50  ;;  %v197_v59 = vmul.f32 0.0, %v572_v50 }
 0x120   :  { %186 = vrot.lane.b32.xlu0 %v184_v51, %s648_s6 }
 0x192   :  { %v187_v52 = vpop.permute.xlu0 %186 }
 0x193   :  { %v189_v53 = vadd.f32 %v187_v52, %v160_v41 }
 0x195   :  { %573 = vtanh.f32 %v189_v53 }
 0x19f   :  { %v574_v56 = vpop.eup %573 }
 0x1a0   :  { %193 = vrot.lane.b32.xlu1 %v574_v56, %s651_s7 }
 0x212   :  { %v194_v58 = vpop.permute.xlu1 %193 }
 0x213   :  { %v196_v60 = vmul.f32 %v194_v58, %v191_v57 }
 0x215   :  { %v198_v61 = vadd.f32 %v197_v59, %v196_v60 }
 0x217   :  { %212 = vperm.xlu0 %551, %v198_v61   ;;  %206 = vperm.xlu1 %550, %v198_v61  }
 0x21b   :  { %554 = vset.pattern.permute.xlu0 %v652_v62  ;;  %552 = vset.pattern.permute.xlu1 %v653_v63 }
 0x21c   :  { %230 = vperm.xlu0 %554, %v198_v61   ;;  %218 = vperm.xlu1 %552, %v198_v61  }
 0x220   :  { %553 = vset.pattern.permute.xlu1 %v654_v0  ;;  %556 = vset.pattern.permute.xlu0 %v650_v55 }
 0x221   :  { %224 = vperm.xlu1 %553, %v198_v61  }
 0x225   :  { %555 = vset.pattern.permute.xlu1 %v655_v1 }
 0x226   :  { %236 = vperm.xlu1 %555, %v198_v61  }
 0x22a   :  { %557 = vset.pattern.permute.xlu1 %v649_v54 }
 0x296   :  { %v207_v2 = vpop.permute.xlu1 %206  ;;  %v213_v4 = vpop.permute.xlu0 %212 }
 0x297   :  { %v209_v3 = vmul.f32 %v207_v2, %v702_v10  ;;  %v215_v6 = vmul.f32 %v213_v4, %v704_v11 }
 0x299   :  { %v210_v5 = vadd.f32 %v708_v14, %v209_v3 }
 0x29b   :  { %v219_v7 = vpop.permute.xlu1 %218  ;;  %v216_v8 = vadd.f32 %v215_v6, %v210_v5  ;;  %v231_v13 = vpop.permute.xlu0 %230 }
 0x29c   :  { %v221_v9 = vmul.f32 %v219_v7, %v706_v12  ;;  %v233_v20 = vmul.f32 %v231_v13, %v714_v19 }
 0x29e   :  { %v222_v17 = vadd.f32 %v221_v9, %v216_v8 }
 0x2a0   :  { %v225_v16 = vpop.permute.xlu1 %224 }
 0x2a1   :  { %v227_v18 = vmul.f32 %v225_v16, %v710_v15 }
 0x2a3   :  { %v228_v21 = vadd.f32 %v227_v18, %v222_v17 }
 0x2a5   :  { %v234_v23 = vadd.f32 %v233_v20, %v228_v21  ;;  %v237_v24 = vpop.permute.xlu1 %236 }
 0x2a6   :  { %v239_v25 = vmul.f32 %v237_v24, %v718_v22 }
 0x2a8   :  { %v240_v26 = vadd.f32 %v239_v25, %v234_v23 }
 0x2aa   :  { %249 = vrot.lane.b32.xlu1 %v240_v26, %s647_s1  ;;  %v241_v27 = vadd.f32 %v240_v26, %v724_v42 }
 0x2ac   :  { %v513_v28 = vmul.f32 -1.442695, %v241_v27 }
 0x2ae   :  { %575 = vpow2.f32 %v513_v28 }
 0x2b8   :  { %v576_v29 = vpop.eup %575 }
 0x2b9   :  { %v245_v30 = vadd.f32 1.0, %v576_v29 }
 0x2bb   :  { %577 = vrcp.f32 %v245_v30 }
 0x2c5   :  { %v578_v31 = vpop.eup %577 }
 0x2c6   :  { %v259_v37 = vsub.f32 1.0, %v578_v31  ;;  %v265_v39 = vmul.f32 %v578_v31, %v198_v61 }
 0x31c   :  { %v250_v32 = vpop.permute.xlu1 %249 }
 0x31d   :  { %v252_v33 = vmul.f32 %v578_v31, %v250_v32 }
 0x31f   :  { %254 = vrot.lane.b32.xlu0 %v252_v33, %s648_s6 }
 0x391   :  { %v255_v34 = vpop.permute.xlu0 %254 }
 0x392   :  { %v257_v35 = vadd.f32 %v255_v34, %v724_v42 }
 0x394   :  { %579 = vtanh.f32 %v257_v35 }
 0x39e   :  { %v580_v36 = vpop.eup %579 }
 0x39f   :  { %261 = vrot.lane.b32.xlu1 %v580_v36, %s651_s7 }
 0x411   :  { %v262_v38 = vpop.permute.xlu1 %261 }
 0x412   :  { %v264_v40 = vmul.f32 %v262_v38, %v259_v37 }
 0x414   :  { %v266_v41 = vadd.f32 %v265_v39, %v264_v40 }
 0x416   :  { %280 = vperm.xlu1 %557, %v266_v41   ;;  %274 = vperm.xlu0 %556, %v266_v41  }
 0x41a   :  { %558 = vset.pattern.permute.xlu1 %v653_v63  ;;  %559 = vset.pattern.permute.xlu0 %v654_v0 }
 0x41b   :  { %286 = vperm.xlu1 %558, %v266_v41   ;;  %292 = vperm.xlu0 %559, %v266_v41  }
 0x41f   :  { %560 = vset.pattern.permute.xlu1 %v652_v62  ;;  %563 = vset.pattern.permute.xlu0 %v649_v54 }
 0x420   :  { %298 = vperm.xlu1 %560, %v266_v41  }
 0x424   :  { %561 = vset.pattern.permute.xlu1 %v655_v1 }
 0x425   :  { %304 = vperm.xlu1 %561, %v266_v41  }
 0x429   :  { %562 = vset.pattern.permute.xlu1 %v650_v55 }
 0x495   :  { %v281_v42 = vpop.permute.xlu1 %280  ;;  %v275_v43 = vpop.permute.xlu0 %274 }
 0x496   :  { %v277_v46 = vmul.f32 %v275_v43, %v702_v10  ;;  %v283_v47 = vmul.f32 %v281_v42, %v704_v11 }
 0x498   :  { %v278_v48 = vadd.f32 %v708_v14, %v277_v46 }
 0x49a   :  { %v287_v49 = vpop.permute.xlu1 %286  ;;  %v284_v50 = vadd.f32 %v283_v47, %v278_v48  ;;  %v293_v52 = vpop.permute.xlu0 %292 }
 0x49b   :  { %v289_v51 = vmul.f32 %v287_v49, %v706_v12  ;;  %v295_v54 = vmul.f32 %v293_v52, %v710_v15  ;;  %v516_v49 = vld [vmem:[#allocation4 + $0x20] ss:$0 sm:$0xff]  ;;  %v519_v52 = vld [vmem:[#allocation4 + $0x21] ss:$0 sm:$0xff] }
 0x49d   :  { %v290_v53 = vadd.f32 %v289_v51, %v284_v50 }
 0x49f   :  { %v299_v56 = vpop.permute.xlu1 %298  ;;  %v296_v57 = vadd.f32 %v295_v54, %v290_v53 }
 0x4a0   :  { %v301_v55 = vmul.f32 %v299_v56, %v714_v19 }
 0x4a2   :  { %v302_v59 = vadd.f32 %v301_v55, %v296_v57  ;;  %v520_v57 = vld [vmem:[#allocation4 + $0x22] ss:$0 sm:$0xff] }
 0x4a4   :  { %v305_v58 = vpop.permute.xlu1 %304 }
 0x4a5   :  { %v307_v60 = vmul.f32 %v305_v58, %v718_v22 }
 0x4a7   :  { %v308_v61 = vadd.f32 %v307_v60, %v302_v59 }
 0x4a9   :  { %317 = vrot.lane.b32.xlu0 %v308_v61, %s647_s1  ;;  %v309_v2 = vadd.f32 %v308_v61, %v726_v44 }
 0x4ab   :  { %v514_v3 = vmul.f32 -1.442695, %v309_v2 }
 0x4ad   :  { %581 = vpow2.f32 %v514_v3 }
 0x4b7   :  { %v582_v4 = vpop.eup %581 }
 0x4b8   :  { %v313_v5 = vadd.f32 1.0, %v582_v4 }
 0x4ba   :  { %583 = vrcp.f32 %v313_v5 }
 0x4c4   :  { %v584_v6 = vpop.eup %583 }
 0x4c5   :  { %v327_v17 = vsub.f32 1.0, %v584_v6  ;;  %v333_v20 = vmul.f32 %v584_v6, %v266_v41 }
 0x51b   :  { %v318_v7 = vpop.permute.xlu0 %317 }
 0x51c   :  { %v320_v8 = vmul.f32 %v584_v6, %v318_v7 }
 0x51e   :  { %322 = vrot.lane.b32.xlu1 %v320_v8, %s648_s6 }
 0x590   :  { %v323_v9 = vpop.permute.xlu1 %322 }
 0x591   :  { %v325_v13 = vadd.f32 %v323_v9, %v726_v44 }
 0x593   :  { %585 = vtanh.f32 %v325_v13 }
 0x59d   :  { %v586_v16 = vpop.eup %585 }
 0x59e   :  { %329 = vrot.lane.b32.xlu0 %v586_v16, %s651_s7 }
 0x610   :  { %v330_v18 = vpop.permute.xlu0 %329 }
 0x611   :  { %v332_v21 = vmul.f32 %v330_v18, %v327_v17 }
 0x613   :  { %v334_v23 = vadd.f32 %v333_v20, %v332_v21 }
 0x615   :  { %346 = vperm.xlu0 %563, %v334_v23   ;;  %340 = vperm.xlu1 %562, %v334_v23  }
 0x619   :  { %566 = vset.pattern.permute.xlu0 %v652_v62  ;;  %564 = vset.pattern.permute.xlu1 %v653_v63 }
 0x61a   :  { %364 = vperm.xlu0 %566, %v334_v23   ;;  %352 = vperm.xlu1 %564, %v334_v23  }
 0x61e   :  { %565 = vset.pattern.permute.xlu1 %v654_v0  ;;  %568 = vset.pattern.permute.xlu0 %v655_v1 }
 0x61f   :  { %358 = vperm.xlu1 %565, %v334_v23  }
 0x623   :  { %567 = vset.pattern.permute.xlu1 %v655_v1 }
 0x624   :  { %370 = vperm.xlu1 %567, %v334_v23  }
 0x694   :  { %v341_v44 = vpop.permute.xlu1 %340  ;;  %v347_v25 = vpop.permute.xlu0 %346 }
 0x695   :  { %v343_v24 = vmul.f32 %v341_v44, %v702_v10  ;;  %v349_v62 = vmul.f32 %v347_v25, %v704_v11 }
 0x697   :  { %v344_v26 = vadd.f32 %v708_v14, %v343_v24 }
 0x699   :  { %v353_v27 = vpop.permute.xlu1 %352  ;;  %v350_v63 = vadd.f32 %v349_v62, %v344_v26  ;;  %v365_v29 = vpop.permute.xlu0 %364 }
 0x69a   :  { %v355_v28 = vmul.f32 %v353_v27, %v706_v12  ;;  %v367_v1 = vmul.f32 %v365_v29, %v714_v19 }
 0x69c   :  { %v356_v30 = vadd.f32 %v355_v28, %v350_v63 }
 0x69e   :  { %v359_v0 = vpop.permute.xlu1 %358 }
 0x69f   :  { %v361_v31 = vmul.f32 %v359_v0, %v710_v15 }
 0x6a1   :  { %v362_v32 = vadd.f32 %v361_v31, %v356_v30 }
 0x6a3   :  { %v368_v33 = vadd.f32 %v367_v1, %v362_v32  ;;  %v371_v34 = vpop.permute.xlu1 %370 }
 0x6a4   :  { %v373_v10 = vmul.f32 %v371_v34, %v718_v22  ;;  %v41_v22 = vld [vmem:[#allocation4 + $0x18] sm:$0x3f] }
 0x6a5   :  { %531 = vmatpush3.msk.msra.mxu1 %vm411_vm4, %v41_v22 }
 0x6a6   :  { %v374_v35 = vadd.f32 %v373_v10, %v368_v33 }
 0x6a8   :  { %383 = vrot.lane.b32.xlu1 %v374_v35, %s647_s1  ;;  %v375_v11 = vadd.f32 %v374_v35, %v728_v45 }
 0x6aa   :  { %v515_v14 = vmul.f32 -1.442695, %v375_v11 }
 0x6ac   :  { %587 = vpow2.f32 %v515_v14 }
 0x6b6   :  { %v588_v12 = vpop.eup %587 }
 0x6b7   :  { %v379_v36 = vadd.f32 1.0, %v588_v12 }
 0x6b9   :  { %589 = vrcp.f32 %v379_v36 }
 0x6c3   :  { %v590_v37 = vpop.eup %589 }
 0x6c4   :  { %v393_v41 = vsub.f32 1.0, %v590_v37  ;;  %v399_v43 = vmul.f32 %v590_v37, %v334_v23 }
 0x71a   :  { %v384_v38 = vpop.permute.xlu1 %383 }
 0x71b   :  { %v386_v15 = vmul.f32 %v590_v37, %v384_v38 }
 0x71d   :  { %388 = vrot.lane.b32.xlu0 %v386_v15, %s648_s6 }
 0x78f   :  { %v389_v19 = vpop.permute.xlu0 %388 }
 0x790   :  { %v391_v39 = vadd.f32 %v389_v19, %v728_v45 }
 0x792   :  { %591 = vtanh.f32 %v391_v39 }
 0x79c   :  { %v592_v40 = vpop.eup %591 }
 0x79d   :  { %395 = vrot.lane.b32.xlu1 %v592_v40, %s651_s7 }
 0x80f   :  { %v396_v42 = vpop.permute.xlu1 %395 }
 0x810   :  { %v398_v46 = vmul.f32 %v396_v42, %v393_v41 }
 0x812   :  { %v400_v47 = vadd.f32 %v399_v43, %v398_v46 }
 0x814   :  { %406 = vrot.lane.b32.xlu0 %v400_v47, %s651_s7 }
 0x886   :  { %v407_v48 = vpop.permute.xlu0 %406 }
 0x887   :  { %533 = vmatmul.mubr.msk.f32.vlgmr.msra.gmra.mrb[0].mxu1 %vm408_vm5, %v407_v48 }
 0x95a   :  { %v481_v50 = vpop.f32.mrb[0].mxu1 }
 0x95b   :  { %v482_v45 = vadd.f32 %v516_v49, %v481_v50  ;;  %v534_v51 = vpop.f32.mrb[1].mxu1 }
 0x95d   :  { %v485_v53 = vmax.f32 %v482_v45, 0.0 }
 0x95f   :  { %v490_v54 = vmul.f32 %v519_v52, %v485_v53 }
 0x961   :  { %v492_v56 = vsel %vm491_vm6, %v490_v54, 0.0 }
 0x962   :  { %493 = vadd.xlane.f32.xlu1 %v492_v56 }
 0x9ef   :  { %v494_v55 = vpop.xlane.xlu1 %493 }
 0x9f0   :  { %v499_v58 = vadd.f32 %v520_v57, %v494_v55 }
 0x9f2   :  { %501 = vst.msk [vmem:[%s793_s2] sm:$0x3] %vm500_vm7, %v499_v58 }
 0x9f3   :  { %506 = vsyncpa [#allocation3], 1 }
 0x9f4   :  { %507 = vsyncpa [#allocation5], 1 }

</bundles_post_ra>
